<compile_context>
chip_gen: v6e
topology: v6e:2x2x1
jax: 0.10.0
libtpu: 0.0.40
codegen_flags: <defaults>
</compile_context>

<pallas_src>
import functools

import jax
import jax.numpy as jnp
from jax.experimental import pallas as pl
from jax.experimental.pallas import tpu as pltpu


def _round_up(a, b):
    return ((a + b - 1) // b) * b


def _vmem_budgets():
    """Returns (tile_budget_bytes, vmem_limit_bytes) gated on physical VMEM."""
    vmem_bytes = None
    try:
        vmem_bytes = getattr(pltpu.get_tpu_info(), "vmem_capacity_bytes", None)
    except Exception:
        vmem_bytes = None
    if vmem_bytes is not None and vmem_bytes >= 120 * 1024 * 1024:
        # v5e / v6e: 128 MiB physical VMEM -> bigger tiles, fewer grid steps.
        return 80 * 1024 * 1024, 100 * 1024 * 1024
    # v7x (64 MiB physical) or unknown: stay conservative.
    return 32 * 1024 * 1024, 48 * 1024 * 1024


def _choose_tiles(n_rows, hw, itemsize, tile_budget):
    """Pick (row_tile, hw_tile): 2 inputs x 2 double-buffers must fit budget."""
    bytes_per_row = hw * itemsize
    max_rows = tile_budget // (4 * bytes_per_row)     # 2 inputs * 2 buffers
    if max_rows >= 8:
        # Full-HW rows fit: single HW chunk, as many rows as budget allows.
        row_tile = min((max_rows // 8) * 8, _round_up(n_rows, 8))
        # v7x megacore: keep >= 2 grid steps over rows so both TCs get work.
        if n_rows >= 16:
            row_tile = min(row_tile, _round_up(-(-n_rows // 2), 8))
        hw_tile = hw
    else:
        # H*W too large for even an 8-row block: chunk the lane axis
        # (128-aligned) and accumulate partial sums in VMEM scratch.
        row_tile = 8
        max_hw = tile_budget // (4 * 8 * itemsize)
        hw_tile = max(128, (max_hw // 128) * 128)
    return row_tile, hw_tile


def _soft_dice_kernel(x_ref, y_ref, dc_ref, tp_ref, s_ref, *,
                      smooth, hw, hw_tile, mask_hw):
    k = pl.program_id(1)

    @pl.when(k == 0)
    def _():
        tp_ref[...] = jnp.zeros_like(tp_ref)
        s_ref[...] = jnp.zeros_like(s_ref)

    x = x_ref[...].astype(jnp.float32)          # (row_tile, hw_tile)
    y = y_ref[...].astype(jnp.float32)

    if mask_hw:
        # Ragged tail HW chunk: zero out-of-range lanes (unspecified data).
        col = k * hw_tile + jax.lax.broadcasted_iota(jnp.int32, x.shape, 1)
        valid = col < hw
        x = jnp.where(valid, x, 0.0)
        y = jnp.where(valid, y, 0.0)

    # tp = sum(x*y);  s = sum(x) + sum(y)   (=> fp + fn = s - 2*tp)
    tp_ref[...] += jnp.sum(x * y, axis=-1, keepdims=True)
    s_ref[...] += jnp.sum(x + y, axis=-1, keepdims=True)

    @pl.when(k == pl.num_programs(1) - 1)
    def _():
        # dc = (2*tp + smooth) / (2*tp + fp + fn + smooth)
        dc_ref[...] = (2.0 * tp_ref[...] + smooth) / (s_ref[...] + smooth)


def soft_dice_loss(x, y, smooth=1.0, row_tile=None, hw_tile=None):
    """x, y: (B, C, H, W). Scalar f32 loss matching SoftDiceLoss(smooth, dims=(-2,-1)).

    Inputs may be bf16 / int8: the kernel upcasts in-register, so feeding
    low-precision arrays directly (no wrapper astype) cuts streamed HBM bytes.
    """
    B, C, H, W = x.shape
    BC, HW = B * C, H * W

    xf = x.reshape(BC, HW)
    yf = y.reshape(BC, HW)

    tile_budget, vmem_limit = _vmem_budgets()
    itemsize = max(xf.dtype.itemsize, yf.dtype.itemsize)
    auto_rt, auto_ht = _choose_tiles(BC, HW, itemsize, tile_budget)
    row_tile = auto_rt if row_tile is None else row_tile
    hw_tile = auto_ht if hw_tile is None else hw_tile

    assert row_tile % 8 == 0 or row_tile == BC
    assert hw_tile == HW or hw_tile % 128 == 0

    mask_hw = (hw_tile != HW) and (HW % hw_tile != 0)
    grid = (pl.cdiv(BC, row_tile), pl.cdiv(HW, hw_tile))

    # TODO(synk): smooth is baked statically, so each distinct smooth value
    # recompiles; pass it via SMEM if that ever matters.
    kernel = functools.partial(_soft_dice_kernel, smooth=float(smooth),
                               hw=HW, hw_tile=hw_tile, mask_hw=mask_hw)

    dc = pl.pallas_call(
        kernel,
        out_shape=jax.ShapeDtypeStruct((BC, 1), jnp.float32),
        grid_spec=pltpu.PrefetchScalarGridSpec(
            num_scalar_prefetch=0,
            grid=grid,
            in_specs=[
                pl.BlockSpec((row_tile, hw_tile), lambda i, k: (i, k)),
                pl.BlockSpec((row_tile, hw_tile), lambda i, k: (i, k)),
            ],
            out_specs=pl.BlockSpec((row_tile, 1), lambda i, k: (i, 0)),
            scratch_shapes=[
                pltpu.VMEM((row_tile, 1), jnp.float32),   # tp accumulator
                pltpu.VMEM((row_tile, 1), jnp.float32),   # sum(x)+sum(y) acc
            ],
        ),
        compiler_params=pltpu.CompilerParams(
            dimension_semantics=("parallel", "arbitrary"),
            vmem_limit_bytes=vmem_limit,
        ),
    )(xf, yf)

    # Ragged tail rows (unspecified data) are dropped here, BEFORE the mean.
    return 1.0 - jnp.mean(dc[:BC, 0])


def soft_dice_loss_ref(x, y, smooth=1.0, dims=(-2, -1)):
    x = x.astype(jnp.float32)
    y = y.astype(jnp.float32)
    tp = (x * y).sum(dims)
    fp = (x * (1 - y)).sum(dims)
    fn = ((1 - x) * y).sum(dims)
    dc = (2 * tp + smooth) / (2 * tp + fp + fn + smooth)
    return 1 - dc.mean()


if __name__ == "__main__":
    key = jax.random.PRNGKey(0)
    kx, ky = jax.random.split(key)

    # Main small example: predictions in [0,1], targets in {0,1}.
    B, C, H, W = 2, 4, 16, 16
    x = jax.random.uniform(kx, (B, C, H, W), dtype=jnp.float32)
    y = (jax.random.uniform(ky, (B, C, H, W)) > 0.5).astype(jnp.float32)

    loss = jax.block_until_ready(soft_dice_loss(x, y, smooth=1.0))
    ref = soft_dice_loss_ref(x, y, smooth=1.0)
    assert jnp.allclose(loss, ref, atol=1e-5, rtol=1e-5), (loss, ref)

    # Also exercise the no-pad ragged-row path and the HW-chunked path with a
    # masked tail chunk (BC=9 not a multiple of 8; HW=192 with hw_tile=128).
    B2, C2, H2, W2 = 3, 3, 16, 12
    kx2, ky2 = jax.random.split(jax.random.PRNGKey(0))
    x2 = jax.random.uniform(kx2, (B2, C2, H2, W2), dtype=jnp.float32)
    y2 = (jax.random.uniform(ky2, (B2, C2, H2, W2)) > 0.5).astype(jnp.float32)
    loss2 = jax.block_until_ready(
        soft_dice_loss(x2, y2, smooth=1.0, row_tile=8, hw_tile=128))
    ref2 = soft_dice_loss_ref(x2, y2, smooth=1.0)
    assert jnp.allclose(loss2, ref2, atol=1e-5, rtol=1e-5), (loss2, ref2)

    print("KERNEL_OK")
</pallas_src>

<mosaic_0001>
module attributes {stable_mosaic.version = 11 : i64} {
  func.func @_soft_dice_kernel(%arg0: i32, %arg1: i32, %arg2: memref<8x256xf32, #tpu.memory_space<vmem>>, %arg3: memref<8x256xf32, #tpu.memory_space<vmem>>, %arg4: memref<8x1xf32, #tpu.memory_space<vmem>>, %arg5: memref<8x1xf32, #tpu.memory_space<vmem>>, %arg6: memref<8x1xf32, #tpu.memory_space<vmem>>) attributes {dimension_semantics = [#tpu.dimension_semantics<parallel>, #tpu.dimension_semantics<arbitrary>], iteration_bounds = array<i64: 1, 1>, scalar_prefetch = 0 : i64, scratch_operands = 2 : i64, tpu.core_type = #tpu.core_type<tc>, window_params = [{transform_indices = @transform_0, window_bounds = array<i64: 8, 256>}, {transform_indices = @transform_1, window_bounds = array<i64: 8, 256>}, {transform_indices = @transform_2, window_bounds = array<i64: 8, 1>}]} {
    %c0_i32 = arith.constant 0 : i32
    %0 = arith.cmpi eq, %arg1, %c0_i32 : i32
    %1 = arith.extui %0 : i1 to i32
    %c0_i32_0 = arith.constant 0 : i32
    %2 = arith.cmpi ne, %1, %c0_i32_0 : i32
    scf.if %2 {
      %cst_15 = arith.constant 0.000000e+00 : f32
      %20 = vector.broadcast %cst_15 : f32 to vector<8x1xf32>
      %c0_16 = arith.constant 0 : index
      %c0_17 = arith.constant 0 : index
      %21 = vector.load %arg5[%c0_16, %c0_17] : memref<8x1xf32, #tpu.memory_space<vmem>>, vector<8x1xf32>
      tpu.vector_store %arg5[%c0_16, %c0_17], %20 {strides = array<i32>} : memref<8x1xf32, #tpu.memory_space<vmem>>, vector<8x1xf32>,
      %cst_18 = arith.constant 0.000000e+00 : f32
      %22 = vector.broadcast %cst_18 : f32 to vector<8x1xf32>
      %c0_19 = arith.constant 0 : index
      %c0_20 = arith.constant 0 : index
      %23 = vector.load %arg6[%c0_19, %c0_20] : memref<8x1xf32, #tpu.memory_space<vmem>>, vector<8x1xf32>
      tpu.vector_store %arg6[%c0_19, %c0_20], %22 {strides = array<i32>} : memref<8x1xf32, #tpu.memory_space<vmem>>, vector<8x1xf32>,
    } else {
    }
    %c0 = arith.constant 0 : index
    %c0_1 = arith.constant 0 : index
    %3 = vector.load %arg2[%c0, %c0_1] : memref<8x256xf32, #tpu.memory_space<vmem>>, vector<8x256xf32>
    %c0_2 = arith.constant 0 : index
    %c0_3 = arith.constant 0 : index
    %4 = vector.load %arg3[%c0_2, %c0_3] : memref<8x256xf32, #tpu.memory_space<vmem>>, vector<8x256xf32>
    %c0_4 = arith.constant 0 : index
    %c0_5 = arith.constant 0 : index
    %5 = vector.load %arg5[%c0_4, %c0_5] : memref<8x1xf32, #tpu.memory_space<vmem>>, vector<8x1xf32>
    %6 = arith.mulf %3, %4 : vector<8x256xf32>
    %cst = arith.constant dense<0.000000e+00> : vector<8xf32>
    %7 = vector.multi_reduction <add>, %6, %cst [1] : vector<8x256xf32> to vector<8xf32>
    %8 = vector.shape_cast %7 : vector<8xf32> to vector<8x1xf32>
    %9 = arith.addf %5, %8 : vector<8x1xf32>
    %c0_6 = arith.constant 0 : index
    %c0_7 = arith.constant 0 : index
    %10 = vector.load %arg5[%c0_6, %c0_7] : memref<8x1xf32, #tpu.memory_space<vmem>>, vector<8x1xf32>
    tpu.vector_store %arg5[%c0_6, %c0_7], %9 {strides = array<i32>} : memref<8x1xf32, #tpu.memory_space<vmem>>, vector<8x1xf32>,
    %c0_8 = arith.constant 0 : index
    %c0_9 = arith.constant 0 : index
    %11 = vector.load %arg6[%c0_8, %c0_9] : memref<8x1xf32, #tpu.memory_space<vmem>>, vector<8x1xf32>
    %12 = arith.addf %3, %4 : vector<8x256xf32>
    %cst_10 = arith.constant dense<0.000000e+00> : vector<8xf32>
    %13 = vector.multi_reduction <add>, %12, %cst_10 [1] : vector<8x256xf32> to vector<8xf32>
    %14 = vector.shape_cast %13 : vector<8xf32> to vector<8x1xf32>
    %15 = arith.addf %11, %14 : vector<8x1xf32>
    %c0_11 = arith.constant 0 : index
    %c0_12 = arith.constant 0 : index
    %16 = vector.load %arg6[%c0_11, %c0_12] : memref<8x1xf32, #tpu.memory_space<vmem>>, vector<8x1xf32>
    tpu.vector_store %arg6[%c0_11, %c0_12], %15 {strides = array<i32>} : memref<8x1xf32, #tpu.memory_space<vmem>>, vector<8x1xf32>,
    %c0_i32_13 = arith.constant 0 : i32
    %17 = arith.cmpi eq, %arg1, %c0_i32_13 : i32
    %18 = arith.extui %17 : i1 to i32
    %c0_i32_14 = arith.constant 0 : i32
    %19 = arith.cmpi ne, %18, %c0_i32_14 : i32
    scf.if %19 {
      %c0_15 = arith.constant 0 : index
      %c0_16 = arith.constant 0 : index
      %20 = vector.load %arg5[%c0_15, %c0_16] : memref<8x1xf32, #tpu.memory_space<vmem>>, vector<8x1xf32>
      %cst_17 = arith.constant 2.000000e+00 : f32
      %21 = vector.broadcast %cst_17 : f32 to vector<8x1xf32>
      %22 = arith.mulf %21, %20 : vector<8x1xf32>
      %cst_18 = arith.constant 1.000000e+00 : f32
      %23 = vector.broadcast %cst_18 : f32 to vector<8x1xf32>
      %24 = arith.addf %22, %23 : vector<8x1xf32>
      %c0_19 = arith.constant 0 : index
      %c0_20 = arith.constant 0 : index
      %25 = vector.load %arg6[%c0_19, %c0_20] : memref<8x1xf32, #tpu.memory_space<vmem>>, vector<8x1xf32>
      %cst_21 = arith.constant 1.000000e+00 : f32
      %26 = vector.broadcast %cst_21 : f32 to vector<8x1xf32>
      %27 = arith.addf %25, %26 : vector<8x1xf32>
      %28 = arith.divf %24, %27 : vector<8x1xf32>
      %c0_22 = arith.constant 0 : index
      %c0_23 = arith.constant 0 : index
      %29 = vector.load %arg4[%c0_22, %c0_23] : memref<8x1xf32, #tpu.memory_space<vmem>>, vector<8x1xf32>
      tpu.vector_store %arg4[%c0_22, %c0_23], %28 {strides = array<i32>} : memref<8x1xf32, #tpu.memory_space<vmem>>, vector<8x1xf32>,
    } else {
    }
    return
  }
  func.func @transform_0(%arg0: i32, %arg1: i32) -> (i32, i32) {
    %c0_i32 = arith.constant 0 : i32
    return %arg0, %arg1 : i32, i32
  }
  func.func @transform_1(%arg0: i32, %arg1: i32) -> (i32, i32) {
    %c0_i32 = arith.constant 0 : i32
    return %arg0, %arg1 : i32, i32
  }
  func.func @transform_2(%arg0: i32, %arg1: i32) -> (i32, i32) {
    %c0_i32 = arith.constant 0 : i32
    %c0_i32_0 = arith.constant 0 : i32
    return %arg0, %c0_i32 : i32, i32
  }
}

</mosaic_0001>

<bundles_post_ra>
// kernel: tpu_custom_call.1
= control target key start
LH: loop header
LB: loop body
LE: loop exit
PB: predicated region body
PF: predicated region fallthrough
CT: control target
= control target key end

     0   :  { %7 = vsyncpa [#allocation5], 0  ;;  %s161_s0 = inlined_call_operand.hbm [shape: f32[8,256], index: 0, kind: input, shape index: {}]   ;;  %s162_s1 = inlined_call_operand.hbm [shape: f32[8,256], index: 1, kind: input, shape index: {}]   ;;  %s163_s2 = inlined_call_operand.vmem [shape: f32[8,1], index: 2, kind: output, shape index: {}]  }
   0x1   :  { %8 = vsyncpa [#allocation7], 0  ;;  %s129_s9 = smov [#allocation4]   ;;  %s130_s11 = smov [#allocation6]  }
   0x2   :  { %s15_s10 = sshll.u32 %s129_s9, 4  ;;  %s25_s12 = sshll.u32 %s130_s11, 4  ;;  %s16_s10 = int_to_ptr.vmem [resolvable:$true] %s15_s10  ;;  %s26_s12 = int_to_ptr.vmem [resolvable:$true] %s25_s12 }
   0x3   :  { %s93_s13 = scalar_lea.vmem %s16_s10, 256  ;;  %p98_p1 = scmp.lt.s32.totalorder %s16_s10, %s16_s10 }
   0x4   :  { %p94_p0 = scmp.ne.s32.totalorder %s16_s10, %s93_s13  ;;  %p99_p2 = scmp.lt.s32.totalorder %s93_s13, %s93_s13 }
   0x6   :  { %p100_p3 = por %p99_p2, %p98_p1 }
   0x8   :  { %p101_p4 = pnand %p100_p3, %p94_p0 }
   0xa   :  { %104 = shalt.err (!%p101_p4)
}
   0xb   :  { %18 = dma.hbm_to_vmem [thread:$0]  %s161_s0, 256, %s16_s10, [#allocation5]  }
   0xc   :  { %s113_s16 = scalar_lea.vmem %s26_s12, 256  ;;  %p118_p6 = scmp.lt.s32.totalorder %s26_s12, %s26_s12 }
   0xd   :  { %p114_p5 = scmp.ne.s32.totalorder %s26_s12, %s113_s16  ;;  %p119_p7 = scmp.lt.s32.totalorder %s113_s16, %s113_s16 }
   0xf   :  { %p120_p8 = por %p119_p7, %p118_p6 }
  0x11   :  { %p121_p9 = pnand %p120_p8, %p114_p5 }
  0x13   :  { %124 = shalt.err (!%p121_p9)
}
  0x14   :  { %28 = dma.hbm_to_vmem [thread:$0]  %s162_s1, 256, %s26_s12, [#allocation7]  }
  0x15   :  { %125 = dma.done.wait [#allocation5], 256  }
  0x16   :  { %126 = vsyncadd [#allocation5], 4294967040 }
  0x17   :  { %127 = dma.done.wait [#allocation7], 256  }
  0x18   :  { %128 = vsyncadd [#allocation7], 4294967040  ;;  %vm39_vm0 = vcmask 7168   ;;  %v131_v0 = vmov 0.0   ;;  %v42_v1 = vld [vmem:[#allocation4] sm:$0xff]  ;;  %v43_v2 = vld [vmem:[#allocation4 + $0x8] sm:$0xff] }
  0x19   :  { %41 = vst.msk [vmem:[#allocation3] sm:$0xff] %vm39_vm0, %v131_v0  ;;  %40 = vst.msk [vmem:[#allocation2] sm:$0xff] %vm39_vm0, %v131_v0  ;;  %v44_v3 = vld [vmem:[#allocation6] sm:$0xff]  ;;  %v45_v4 = vld [vmem:[#allocation6 + $0x8] sm:$0xff] }
  0x1a   :  { %v56_v5 = vadd.f32 %v44_v3, %v42_v1  ;;  %v57_v6 = vadd.f32 %v45_v4, %v43_v2  ;;  %v47_v7 = vmul.f32 %v44_v3, %v42_v1  ;;  %v48_v8 = vmul.f32 %v45_v4, %v43_v2 }
  0x1c   :  { %v58_v9 = vadd.f32 %v57_v6, %v56_v5  ;;  %v49_v10 = vadd.f32 %v48_v8, %v47_v7 }
  0x1e   :  { %59 = vadd.xlane.f32.xlu0 %v58_v9 }
  0x20   :  { %v55_v11 = vld [vmem:[#allocation3] sm:$0xff]  ;;  %v46_v14 = vld [vmem:[#allocation2] sm:$0xff] }
  0x22   :  { %50 = vadd.xlane.f32.xlu0 %v49_v10 }
  0xa7   :  { %v60_v12 = vpop.xlane.xlu0 %59 }
  0xa8   :  { %v61_v13 = vadd.f32 %v60_v12, %v55_v11 }
  0xaa   :  { %62 = vst.msk [vmem:[#allocation3] sm:$0xff] %vm39_vm0, %v61_v13 }
  0xab   :  { %v51_v15 = vpop.xlane.xlu0 %50 }
  0xac   :  { %v52_v16 = vadd.f32 %v51_v15, %v46_v14 }
  0xae   :  { %54 = vst.msk [vmem:[#allocation2] sm:$0xff] %vm39_vm0, %v52_v16 }
  0xb1   :  { %v69_v17 = vld [vmem:[#allocation3] sm:$0xff] }
  0xb2   :  { %v70_v18 = vadd.f32 1.0, %v69_v17 }
  0xb4   :  { %83 = vrcp.f32 %v70_v18 }
  0xb5   :  { %v66_v19 = vld [vmem:[#allocation2] sm:$0xff] }
  0xb6   :  { %v67_v20 = vmul.f32 2.0, %v66_v19 }
  0xb8   :  { %v68_v21 = vadd.f32 1.0, %v67_v20 }
  0xc1   :  { %v84_v22 = vpop.eup %83 }
  0xc2   :  { %v72_v23 = vmul.f32 %v84_v22, %v68_v21 }
  0xc4   :  { %73 = vst.msk [vmem:[%s163_s2] sm:$0xff] %vm39_vm0, %v72_v23 }
  0xc5   :  { %78 = vsyncpa [#allocation5], 1 }
  0xc6   :  { %79 = vsyncpa [#allocation7], 1 }

</bundles_post_ra>
